<compile_context>
chip_gen: v5e
topology: v5e:2x2
jax: 0.10.0
libtpu: 0.0.40
codegen_flags: <defaults>
</compile_context>

<pallas_src>
import functools
import math

import jax
import jax.numpy as jnp
from jax import lax
from jax.experimental import pallas as pl
from jax.experimental.pallas import tpu as pltpu

_LOG_2PI = math.log(2.0 * math.pi)

_COLS = 512                        # lane-dense slab width (multiple of 128)
_CHUNK_ROWS = 512                  # in-kernel strip-mine: 512x512 f32 ~ 1 MiB temps
_VMEM_LIMIT_BYTES = 32 * 1024 * 1024


def _default_block_bytes():
    """Target HBM->VMEM block size (per buffer), generation aware.

    ~1/8 of physical VMEM capped at 8 MiB -> 8 MiB on v5e/v6e (128 MiB VMEM)
    and on v7x (64 MiB).  Double-buffered input (2x8 MiB) plus ~2-3 MiB of
    in-kernel temporaries stays well inside the 32 MiB scoped-VMEM limit we
    request explicitly via CompilerParams.
    """
    try:
        vmem = int(pltpu.get_tpu_info().vmem_capacity_bytes)
    except Exception:  # non-TPU / interpret fallback
        vmem = 64 * 1024 * 1024
    return max(1 << 20, min(8 << 20, vmem // 8))


def _make_sumsq_kernel(num_tiles, steps, tile_r, masked):
    """Streaming sum(z^2) kernel over a (n_par, steps) grid.

    Grid axis 0 ("parallel") gives each TensorCore an independent partial sum
    accumulated into its own resident (8, _COLS) output block; axis 1
    ("arbitrary") is the reduction axis.  Per-step work is pure VPU
    (mul + vreg-wise adds folded into the accumulator) -- no cross-lane
    reductions, no MXU; the kernel is firmly HBM-DMA bound.
    """
    n_chunks = tile_r // _CHUNK_ROWS
    rem_rows = tile_r - n_chunks * _CHUNK_ROWS

    def kernel(z_ref, o_ref):
        j = pl.program_id(1)

        @pl.when(j == 0)
        def _():
            o_ref[...] = jnp.zeros_like(o_ref)

        def chunk_sumsq(row0, nrows):
            zc = z_ref[pl.ds(row0, nrows), :].astype(jnp.float32)
            zz = zc * zc
            # (nrows, C) -> (nrows//8, 8, C): summing the leading axis adds
            # whole vregs at the same (sublane, lane) position -> pure VPU.
            return zz.reshape(nrows // 8, 8, _COLS).sum(axis=0)

        def tile_sumsq():
            acc = jnp.zeros((8, _COLS), jnp.float32)
            if n_chunks > 0:
                def body(i, a):
                    r0 = pl.multiple_of(i * _CHUNK_ROWS, _CHUNK_ROWS)
                    return a + chunk_sumsq(r0, _CHUNK_ROWS)
                acc = lax.fori_loop(0, n_chunks, body, acc)
            if rem_rows > 0:
                acc = acc + chunk_sumsq(n_chunks * _CHUNK_ROWS, rem_rows)
            return acc

        if masked:
            # Odd tile counts: the trailing (p, j) pair re-reads a clamped
            # (duplicate) block -- it must not be double counted.
            p = pl.program_id(0)

            @pl.when(p * steps + j < num_tiles)
            def _():
                o_ref[...] += tile_sumsq()
        else:
            o_ref[...] += tile_sumsq()

    return kernel


def nll_loss(z, sum_log_det, *, k=32 * 32, max_tile_rows=None):
    """JAX/Pallas equivalent of Loss(k)(z, sum_log_det). Returns a scalar."""
    b = z.shape[0]
    n = int(z.size)
    d = n // b                                     # prod(z.shape[1:])

    flat = z.reshape(-1)                           # same element order as torch .reshape(B,-1)
    dtype_bytes = jnp.dtype(z.dtype).itemsize

    if max_tile_rows is None:
        block_bytes = _default_block_bytes()
        max_tile_rows = max(8, (block_bytes // (_COLS * dtype_bytes)) // 8 * 8)

    full_rows = n // _COLS
    r8 = (full_rows // 8) * 8                      # 8-row (sublane) aligned prefix

    if r8 == 0:
        # Tiny input (< 4096 elems): pad to a single (8, _COLS) block.  The
        # copy here is a few KiB -- negligible (zeros add nothing to sum z^2).
        slab = jnp.pad(flat, (0, 8 * _COLS - n)).reshape(8, _COLS)
        num_tiles, tile_r = 1, 8
        tail = None
    else:
        # Evenly tiled prefix: num_tiles blocks of tile_r rows, NO pad copy.
        num_tiles = -(-r8 // max_tile_rows)                    # ceil
        tile_r = max(8, ((r8 // num_tiles) // 8) * 8)          # multiple of 8
        kernel_rows = num_tiles * tile_r
        kernel_elems = kernel_rows * _COLS
        slab = flat[:kernel_elems].reshape(kernel_rows, _COLS)  # keep HBM dtype
        tail = flat[kernel_elems:] if kernel_elems < n else None

    # Unconditional 2-way split across TensorCores when there are >=2 tiles
    # (a no-op on single-core v5e/v6e; uses both TCs on v7x).
    n_par = 2 if num_tiles >= 2 else 1
    steps = -(-num_tiles // n_par)
    masked = (n_par * steps != num_tiles)

    kernel = _make_sumsq_kernel(num_tiles, steps, tile_r, masked)

    partials = pl.pallas_call(
        kernel,
        out_shape=jax.ShapeDtypeStruct((n_par, 8, _COLS), jnp.float32),
        grid_spec=pltpu.PrefetchScalarGridSpec(
            num_scalar_prefetch=0,
            grid=(n_par, steps),
            in_specs=[
                pl.BlockSpec(
                    (tile_r, _COLS),
                    lambda p, j: (jnp.minimum(p * steps + j, num_tiles - 1), 0)),
            ],
            # Resident accumulator block per parallel slice (constant over j).
            out_specs=pl.BlockSpec((None, 8, _COLS), lambda p, j: (p, 0, 0)),
        ),
        compiler_params=pltpu.CompilerParams(
            dimension_semantics=("parallel", "arbitrary"),
            vmem_limit_bytes=_VMEM_LIMIT_BYTES,
        ),
    )(slab)

    # ---- scalar epilogue (tiny) ---------------------------------------------
    sumsq = partials.sum()                                   # global sum(z^2)
    if tail is not None and tail.size:
        t = tail.astype(jnp.float32)
        sumsq = sumsq + jnp.sum(t * t)                       # ragged remainder

    mean_sld = jnp.mean(sum_log_det.astype(jnp.float32))
    # -mean_b( -0.5*sum_j z^2 - 0.5*log(2pi)*D - log(k)*D + sld_b )
    loss = (0.5 * sumsq / b
            + jnp.float32(0.5 * _LOG_2PI * d)
            + jnp.float32(math.log(k) * d)
            - mean_sld)
    return loss


def _reference(z, sum_log_det, k):
    prior = -0.5 * (z.astype(jnp.float32) ** 2 + _LOG_2PI)
    b = z.shape[0]
    d = z.size // b
    prior = prior.reshape(b, -1).sum(-1) - math.log(k) * d
    ll = prior + sum_log_det.astype(jnp.float32)
    return -ll.mean()


if __name__ == "__main__":
    key = jax.random.PRNGKey(0)
    k1, k2, k3, k4 = jax.random.split(key, 4)
    k_param = 32 * 32                               # module default

    # Case 1: typical flow latent after squeezing a 3x32x32 image -> (B,12,16,16).
    z1 = jax.random.normal(k1, (2, 12, 16, 16), dtype=jnp.float32)
    sld1 = jax.random.normal(k2, (2,), dtype=jnp.float32) * 10.0
    loss_fn1 = jax.jit(functools.partial(nll_loss, k=k_param))
    out1 = jax.block_until_ready(loss_fn1(z1, sld1))
    ref1 = _reference(z1, sld1, k_param)
    assert jnp.allclose(out1, ref1, rtol=3e-5, atol=1e-2), (out1, ref1)

    # Case 2: force small tiles to exercise the 2-way core split, the masked
    # (clamped) duplicate block for an odd tile count, and the ragged tail.
    z2 = jax.random.normal(k3, (4, 24, 31, 31), dtype=jnp.float32)
    sld2 = jax.random.normal(k4, (4,), dtype=jnp.float32) * 10.0
    loss_fn2 = jax.jit(functools.partial(nll_loss, k=k_param, max_tile_rows=64))
    out2 = jax.block_until_ready(loss_fn2(z2, sld2))
    ref2 = _reference(z2, sld2, k_param)
    assert jnp.allclose(out2, ref2, rtol=3e-5, atol=1e-2), (out2, ref2)

    print("KERNEL_OK")
</pallas_src>

<mosaic_0001>
module attributes {stable_mosaic.version = 11 : i64} {
  func.func @kernel(%arg0: i32, %arg1: i32, %arg2: memref<8x512xf32, #tpu.memory_space<vmem>>, %arg3: memref<1x8x512xf32, #tpu.memory_space<vmem>>) attributes {dimension_semantics = [#tpu.dimension_semantics<parallel>, #tpu.dimension_semantics<arbitrary>], iteration_bounds = array<i64: 1, 1>, scalar_prefetch = 0 : i64, scratch_operands = 0 : i64, tpu.core_type = #tpu.core_type<tc>, window_params = [{transform_indices = @transform_0, window_bounds = array<i64: 8, 512>}, {transform_indices = @transform_1, window_bounds = array<i64: 1, 8, 512>}]} {
    %c0_i32 = arith.constant 0 : i32
    %0 = arith.cmpi eq, %arg1, %c0_i32 : i32
    %1 = arith.extui %0 : i1 to i32
    %c0_i32_0 = arith.constant 0 : i32
    %2 = arith.cmpi ne, %1, %c0_i32_0 : i32
    scf.if %2 {
      %cst_9 = arith.constant 0.000000e+00 : f32
      %15 = vector.broadcast %cst_9 : f32 to vector<8x512xf32>
      %c0_10 = arith.constant 0 : index
      %c0_11 = arith.constant 0 : index
      %c0_12 = arith.constant 0 : index
      %16 = vector.load %arg3[%c0_10, %c0_11, %c0_12] : memref<1x8x512xf32, #tpu.memory_space<vmem>>, vector<1x8x512xf32>
      %17 = vector.shape_cast %16 : vector<1x8x512xf32> to vector<8x512xf32>
      %18 = vector.shape_cast %15 : vector<8x512xf32> to vector<1x8x512xf32>
      tpu.vector_store %arg3[%c0_10, %c0_11, %c0_12], %18 {strides = array<i32>} : memref<1x8x512xf32, #tpu.memory_space<vmem>>, vector<1x8x512xf32>,
    } else {
    }
    %c0 = arith.constant 0 : index
    %c0_1 = arith.constant 0 : index
    %c0_2 = arith.constant 0 : index
    %3 = vector.load %arg3[%c0, %c0_1, %c0_2] : memref<1x8x512xf32, #tpu.memory_space<vmem>>, vector<1x8x512xf32>
    %4 = vector.shape_cast %3 : vector<1x8x512xf32> to vector<8x512xf32>
    %cst = arith.constant 0.000000e+00 : f32
    %5 = vector.broadcast %cst : f32 to vector<8x512xf32>
    %c0_3 = arith.constant 0 : index
    %c0_4 = arith.constant 0 : index
    %6 = vector.load %arg2[%c0_3, %c0_4] : memref<8x512xf32, #tpu.memory_space<vmem>>, vector<8x512xf32>
    %7 = arith.mulf %6, %6 : vector<8x512xf32>
    %8 = vector.shape_cast %7 : vector<8x512xf32> to vector<1x8x512xf32>
    %cst_5 = arith.constant dense<0.000000e+00> : vector<8x512xf32>
    %9 = vector.multi_reduction <add>, %8, %cst_5 [0] : vector<1x8x512xf32> to vector<8x512xf32>
    %10 = arith.addf %5, %9 : vector<8x512xf32>
    %11 = arith.addf %4, %10 : vector<8x512xf32>
    %c0_6 = arith.constant 0 : index
    %c0_7 = arith.constant 0 : index
    %c0_8 = arith.constant 0 : index
    %12 = vector.load %arg3[%c0_6, %c0_7, %c0_8] : memref<1x8x512xf32, #tpu.memory_space<vmem>>, vector<1x8x512xf32>
    %13 = vector.shape_cast %12 : vector<1x8x512xf32> to vector<8x512xf32>
    %14 = vector.shape_cast %11 : vector<8x512xf32> to vector<1x8x512xf32>
    tpu.vector_store %arg3[%c0_6, %c0_7, %c0_8], %14 {strides = array<i32>} : memref<1x8x512xf32, #tpu.memory_space<vmem>>, vector<1x8x512xf32>,
    return
  }
  func.func @transform_0(%arg0: i32, %arg1: i32) -> (i32, i32) {
    %c1_i32 = arith.constant 1 : i32
    %0 = arith.muli %arg0, %c1_i32 : i32
    %1 = arith.addi %0, %arg1 : i32
    %c0_i32 = arith.constant 0 : i32
    %2 = arith.minsi %1, %c0_i32 : i32
    %c0_i32_0 = arith.constant 0 : i32
    %c0_i32_1 = arith.constant 0 : i32
    return %2, %c0_i32_0 : i32, i32
  }
  func.func @transform_1(%arg0: i32, %arg1: i32) -> (i32, i32, i32) {
    %c0_i32 = arith.constant 0 : i32
    %c0_i32_0 = arith.constant 0 : i32
    %c0_i32_1 = arith.constant 0 : i32
    return %arg0, %c0_i32, %c0_i32_0 : i32, i32, i32
  }
}

</mosaic_0001>

<bundles_post_ra>
// kernel: nll_loss.1
= control target key start
LH: loop header
LB: loop body
LE: loop exit
PB: predicated region body
PF: predicated region fallthrough
CT: control target
= control target key end

     0   :  { %s119_s0 = inlined_call_operand.vmem [shape: f32[8,512], index: 0, kind: input, shape index: {}]   ;;  %s120_s1 = inlined_call_operand.vmem [shape: f32[1,8,512], index: 1, kind: output, shape index: {}]  }
   0x1   :  { %v50_v0 = vld [vmem:[%s119_s0] sm:$0xff]  ;;  %v51_v1 = vld [vmem:[%s119_s0 + $0x8] sm:$0xff]  ;;  %v52_v2 = vld [vmem:[%s119_s0 + $0x10] sm:$0xff] }
   0x2   :  { %v54_v3 = vmul.f32 %v50_v0, %v50_v0  ;;  %v55_v4 = vmul.f32 %v51_v1, %v51_v1  ;;  %v56_v5 = vmul.f32 %v52_v2, %v52_v2  ;;  %v53_v6 = vld [vmem:[%s119_s0 + $0x18] sm:$0xff] }
   0x3   :  { %v57_v7 = vmul.f32 %v53_v6, %v53_v6 }
   0x4   :  { %70 = vst [vmem:[%s120_s1] sm:$0xff] %v54_v3 }
   0x5   :  { %71 = vst [vmem:[%s120_s1 + $0x8] sm:$0xff] %v55_v4 }
   0x6   :  { %72 = vst [vmem:[%s120_s1 + $0x10] sm:$0xff] %v56_v5 }
   0x7   :  { %73 = vst [vmem:[%s120_s1 + $0x18] sm:$0xff] %v57_v7 }

</bundles_post_ra>
